<compile_context>
chip_gen: v7x
topology: tpu7x:2x2x1
jax: 0.10.0
libtpu: 0.0.40
codegen_flags: <defaults>
</compile_context>

<pallas_src>
import jax
import jax.numpy as jnp
from jax.experimental import pallas as pl
from jax.experimental.pallas import tpu as pltpu

# ----------------------------- config ---------------------------------------
VOCAB_SIZE = 16
HIDDEN_SIZE = 7            # hard-coded to 7 in DSSMSix.__init__
MAX_LEN = 8
LATENT_OUT = 32
BATCH = 512                # batched throughput demo; any B works (padded)
MAX_BLOCK_B = 4096         # VMEM-safe cap for all of v5e / v6e / v7x


# ------------------------- embedding table ----------------------------------
def make_bcode_embeddings(vocab_size: int) -> jnp.ndarray:
    """Replicates DSSMSix.__toBcode__: 7-bit binary codes, last row rotated to front."""
    codes = []
    for v in range(vocab_size):
        b = bin(v)[2:]
        codes.append([int(k) for k in "0" * (7 - len(b)) + b])
    codes = [codes[-1]] + codes[:-1]
    return jnp.asarray(codes, dtype=jnp.float32)  # (vocab_size, 7)


# ----------------------------- kernel ---------------------------------------
def dssm_kernel(ids_ref, w1t_ref, wd_ref, b_ref, out_ref):
    # ids_ref : (L, 2*TB) int32 -- query tile in lanes [:TB], doc tile in [TB:]
    # w1t_ref : (lat, L*V) f32  -- fused emb->doc_sem weight^T, b_sem folded in
    # wd_ref  : (2, lat)   f32  -- [wq_diff ; wd_diff] from learn_gamma columns
    # b_ref   : (1, 1)     f32  -- b_g[0] - b_g[1], SMEM scalar
    # out_ref : (1, TB)    f32  -- P(class 0), lane-dense
    seq_len, n2 = ids_ref.shape
    lat, lv = w1t_ref.shape
    vocab = lv // seq_len
    tb = n2 // 2

    ids = ids_ref[...]                                              # int32 (L, 2TB)

    # Flattened (transposed) one-hot: onehot[l*V + v, b] = (ids[l, b] == v).
    # Sublane broadcast + reshape (layout work only) + integer compare against
    # a single (L*V, 1) column that lane-broadcasts -> no MXU pass, no big iota.
    rep = jnp.broadcast_to(ids[:, None, :], (seq_len, vocab, n2)).reshape(lv, n2)
    vcol = jax.lax.broadcasted_iota(jnp.int32, (lv, 1), 0) % vocab  # (L*V, 1)
    onehot = jnp.where(rep == vcol, 1.0, 0.0)                       # (L*V, 2TB) f32

    # Fused embedding gather + doc_sem Linear (+ folded bias) + ReLU for BOTH
    # query and doc (stacked along lanes): one MXU pass.
    s = jnp.maximum(
        jnp.dot(w1t_ref[...], onehot, preferred_element_type=jnp.float32), 0.0)  # (lat, 2TB)

    # learn_gamma + 2-class softmax == sigmoid(logit0 - logit1); the two halves
    # (query / doc weights) are fused into a single (2, lat) x (lat, 2TB) matmul.
    t = jnp.dot(wd_ref[...], s, preferred_element_type=jnp.float32)              # (2, 2TB)
    delta = t[0:1, :tb] + t[1:2, tb:] + b_ref[0, 0]                               # (1, TB)
    out_ref[...] = 1.0 / (1.0 + jnp.exp(-delta))


# ----------------------------- wrapper ---------------------------------------
def _pick_block_b(batch: int) -> int:
    # Aim for ~2 fat grid steps (one per v7x TensorCore); round to lane multiple.
    target = -(-batch // 2)
    target = ((target + 127) // 128) * 128
    return int(max(128, min(target, MAX_BLOCK_B)))


def dssm_forward(q_ids, d_ids, emb, w_sem, b_sem, w_g, b_g, *, block_b=None):
    b, seq_len = q_ids.shape
    vocab, hidden = emb.shape
    lat = w_sem.shape[1]
    hp = jax.lax.Precision.HIGHEST

    if block_b is None:
        block_b = _pick_block_b(b)
    assert block_b % 128 == 0

    # ---- one-time parameter fusion (tiny XLA glue) ----
    # W1[l*V + v, o] = sum_h emb[v, h] * w_sem[l*H + h, o]
    w1 = jnp.einsum("vh,lho->lvo", emb, w_sem.reshape(seq_len, hidden, lat),
                    precision=hp).reshape(seq_len * vocab, lat)
    # Fold b_sem: every flattened one-hot column contains exactly seq_len ones.
    w1 = w1 + b_sem[None, :] / seq_len
    w1_t = w1.T                                                    # (lat, L*V)

    # softmax over 2 classes == sigmoid(logit0 - logit1); aligned repack.
    wd = (w_g[:, 0] - w_g[:, 1]).reshape(2, lat)                   # (2, lat)
    b_diff = (b_g[0] - b_g[1]).reshape(1, 1).astype(jnp.float32)   # (1, 1) SMEM scalar

    # ---- batch tiling: batch on lanes; q/d tiles pre-stacked along lanes ----
    n_tiles = pl.cdiv(b, block_b)
    bp = n_tiles * block_b
    q_t = jnp.pad(q_ids.T, ((0, 0), (0, bp - b)))                  # (L, bp) int32
    d_t = jnp.pad(d_ids.T, ((0, 0), (0, bp - b)))
    ids_st = jnp.concatenate(
        [q_t.reshape(seq_len, n_tiles, block_b),
         d_t.reshape(seq_len, n_tiles, block_b)], axis=2)          # (L, n_tiles, 2*block_b)
    ids_st = jnp.transpose(ids_st, (1, 0, 2))                      # (n_tiles, L, 2*block_b)

    p0 = pl.pallas_call(
        dssm_kernel,
        out_shape=jax.ShapeDtypeStruct((1, bp), jnp.float32),
        grid_spec=pltpu.PrefetchScalarGridSpec(
            num_scalar_prefetch=0,
            grid=(n_tiles,),
            in_specs=[
                pl.BlockSpec((None, seq_len, 2 * block_b), lambda i: (i, 0, 0)),
                pl.BlockSpec((lat, seq_len * vocab), lambda i: (0, 0)),
                pl.BlockSpec((2, lat), lambda i: (0, 0)),
                pl.BlockSpec(memory_space=pltpu.MemorySpace.SMEM),
            ],
            out_specs=pl.BlockSpec((1, block_b), lambda i: (0, i)),
        ),
        compiler_params=pltpu.CompilerParams(
            dimension_semantics=("parallel",),
            vmem_limit_bytes=32 * 1024 * 1024),
    )(ids_st, w1_t, wd, b_diff)

    p0 = p0[0, :b]                                                 # (B,)
    return jnp.stack([p0, 1.0 - p0], axis=1)                       # (B, 2)


# --------------------------- reference (plain JAX) ---------------------------
def dssm_reference(q_ids, d_ids, emb, w_sem, b_sem, w_g, b_g):
    hp = jax.lax.Precision.HIGHEST
    q = jnp.take(emb, q_ids, axis=0).reshape(q_ids.shape[0], -1)
    d = jnp.take(emb, d_ids, axis=0).reshape(d_ids.shape[0], -1)
    q_s = jax.nn.relu(jnp.dot(q, w_sem, precision=hp) + b_sem)
    d_s = jax.nn.relu(jnp.dot(d, w_sem, precision=hp) + b_sem)
    out = jnp.concatenate([q_s, d_s], axis=1)
    logits = jnp.dot(out, w_g, precision=hp) + b_g
    return jax.nn.softmax(logits, axis=1)


# --------------------------------- main --------------------------------------
if __name__ == "__main__":
    key = jax.random.PRNGKey(0)
    k_qs, k_ds, k_wsem, k_bsem, k_wg, k_bg = jax.random.split(key, 6)

    # token-id inputs (the PyTorch forward consumes data['query_'] / data['doc_'])
    q_ids = jax.random.randint(k_qs, (BATCH, MAX_LEN), 0, VOCAB_SIZE, dtype=jnp.int32)
    d_ids = jax.random.randint(k_ds, (BATCH, MAX_LEN), 0, VOCAB_SIZE, dtype=jnp.int32)

    # deterministic parameters (shapes from the module's __init__)
    emb = make_bcode_embeddings(VOCAB_SIZE)                              # (V, 7), frozen
    in_dim = MAX_LEN * HIDDEN_SIZE
    w_sem = jax.random.normal(k_wsem, (in_dim, LATENT_OUT), jnp.float32) * 0.05
    b_sem = jax.random.normal(k_bsem, (LATENT_OUT,), jnp.float32) * 0.05
    w_g = jax.random.normal(k_wg, (2 * LATENT_OUT, 2), jnp.float32) * 0.05
    b_g = jax.random.normal(k_bg, (2,), jnp.float32) * 0.05

    dssm_fn = jax.jit(dssm_forward)
    out = dssm_fn(q_ids, d_ids, emb, w_sem, b_sem, w_g, b_g)
    jax.block_until_ready(out)

    ref = dssm_reference(q_ids, d_ids, emb, w_sem, b_sem, w_g, b_g)
    assert out.shape == (BATCH, 2)
    assert jnp.allclose(jnp.sum(out, axis=1), 1.0, atol=1e-5)
    assert jnp.allclose(out, ref, atol=1e-4, rtol=1e-4)

    print("KERNEL_OK")
</pallas_src>

<mosaic_0001>
module attributes {stable_mosaic.version = 11 : i64} {
  func.func @dssm_kernel(%arg0: i32, %arg1: memref<1x8x512xi32, #tpu.memory_space<vmem>>, %arg2: memref<32x128xf32, #tpu.memory_space<vmem>>, %arg3: memref<2x32xf32, #tpu.memory_space<vmem>>, %arg4: memref<1x1xf32, #tpu.memory_space<smem>>, %arg5: memref<1x256xf32, #tpu.memory_space<vmem>>) attributes {dimension_semantics = [#tpu.dimension_semantics<parallel>], iteration_bounds = array<i64: 2>, scalar_prefetch = 0 : i64, scratch_operands = 0 : i64, tpu.core_type = #tpu.core_type<tc>, window_params = [{transform_indices = @transform_0, window_bounds = array<i64: 1, 8, 512>}, {pipeline_mode = #tpu.pipeline_mode<synchronous>, transform_indices = @transform_1, window_bounds = array<i64: 32, 128>}, {pipeline_mode = #tpu.pipeline_mode<synchronous>, transform_indices = @transform_2, window_bounds = array<i64: 2, 32>}, {transform_indices = @transform_3, window_bounds = array<i64: 1, 1>}, {transform_indices = @transform_4, window_bounds = array<i64: 1, 256>}]} {
    %c0 = arith.constant 0 : index
    %c0_0 = arith.constant 0 : index
    %c0_1 = arith.constant 0 : index
    %0 = vector.load %arg1[%c0, %c0_0, %c0_1] : memref<1x8x512xi32, #tpu.memory_space<vmem>>, vector<1x8x512xi32>
    %1 = vector.shape_cast %0 : vector<1x8x512xi32> to vector<8x512xi32>
    %2 = vector.shape_cast %1 : vector<8x512xi32> to vector<8x1x512xi32>
    %3 = vector.shape_cast %2 : vector<8x1x512xi32> to vector<8x1x512xi32>
    %4 = vector.broadcast %3 : vector<8x1x512xi32> to vector<8x16x512xi32>
    %5 = vector.shape_cast %4 : vector<8x16x512xi32> to vector<128x512xi32>
    %6 = tpu.iota {dimensions = array<i32: 0>} : vector<128x1xi32>
    %c16_i32 = arith.constant 16 : i32
    %c0_i32 = arith.constant 0 : i32
    %7 = arith.cmpi eq, %c16_i32, %c0_i32 : i32
    %c1_i32 = arith.constant 1 : i32
    %8 = arith.select %7, %c1_i32, %c16_i32 : i32
    %9 = vector.broadcast %8 : i32 to vector<128x1xi32>
    %10 = arith.remsi %6, %9 : vector<128x1xi32>
    %c0_i32_2 = arith.constant 0 : i32
    %11 = vector.broadcast %c0_i32_2 : i32 to vector<128x1xi32>
    %12 = arith.cmpi ne, %10, %11 : vector<128x1xi32>
    %c0_i32_3 = arith.constant 0 : i32
    %13 = vector.broadcast %c0_i32_3 : i32 to vector<128x1xi32>
    %14 = arith.cmpi slt, %10, %13 : vector<128x1xi32>
    %c0_i32_4 = arith.constant 0 : i32
    %15 = arith.cmpi slt, %8, %c0_i32_4 : i32
    %16 = vector.broadcast %15 : i1 to vector<128x1xi1>
    %17 = vector.broadcast %16 : vector<128x1xi1> to vector<128x1xi1>
    %18 = arith.xori %14, %17 : vector<128x1xi1>
    %19 = arith.andi %18, %12 : vector<128x1xi1>
    %20 = vector.broadcast %8 : i32 to vector<128x1xi32>
    %21 = arith.addi %10, %20 : vector<128x1xi32>
    %22 = arith.select %19, %21, %10 : vector<128x1xi1>, vector<128x1xi32>
    %23 = vector.broadcast %22 : vector<128x1xi32> to vector<128x512xi32>
    %24 = arith.cmpi eq, %5, %23 : vector<128x512xi32>
    %cst = arith.constant 1.000000e+00 : f32
    %cst_5 = arith.constant 0.000000e+00 : f32
    %25 = vector.broadcast %cst : f32 to vector<128x512xf32>
    %26 = vector.broadcast %cst_5 : f32 to vector<128x512xf32>
    %27 = arith.select %24, %25, %26 : vector<128x512xi1>, vector<128x512xf32>
    %c0_6 = arith.constant 0 : index
    %c0_7 = arith.constant 0 : index
    %28 = vector.load %arg2[%c0_6, %c0_7] : memref<32x128xf32, #tpu.memory_space<vmem>>, vector<32x128xf32>
    %cst_8 = arith.constant dense<0.000000e+00> : vector<32x512xf32>
    %29 = tpu.matmul %28, %27, %cst_8 {dimension_numbers = #tpu.dot_dimension_numbers<[1], [0], [0], [1], [0, 0, 1, 1], [], []>} : vector<32x128xf32>, vector<128x512xf32>, vector<32x512xf32> -> vector<32x512xf32>
    %cst_9 = arith.constant 0.000000e+00 : f32
    %30 = vector.broadcast %cst_9 : f32 to vector<32x512xf32>
    %31 = arith.maximumf %29, %30 : vector<32x512xf32>
    %c0_10 = arith.constant 0 : index
    %c0_11 = arith.constant 0 : index
    %32 = vector.load %arg3[%c0_10, %c0_11] : memref<2x32xf32, #tpu.memory_space<vmem>>, vector<2x32xf32>
    %cst_12 = arith.constant dense<0.000000e+00> : vector<2x512xf32>
    %33 = tpu.matmul %32, %31, %cst_12 {dimension_numbers = #tpu.dot_dimension_numbers<[1], [0], [0], [1], [0, 0, 1, 1], [], []>} : vector<2x32xf32>, vector<32x512xf32>, vector<2x512xf32> -> vector<2x512xf32>
    %34 = vector.extract_strided_slice %33 {offsets = [0, 0], sizes = [1, 256], strides = [1, 1]} : vector<2x512xf32> to vector<1x256xf32>
    %35 = vector.extract_strided_slice %33 {offsets = [1, 256], sizes = [1, 256], strides = [1, 1]} : vector<2x512xf32> to vector<1x256xf32>
    %36 = arith.addf %34, %35 : vector<1x256xf32>
    %c0_13 = arith.constant 0 : index
    %c0_14 = arith.constant 0 : index
    %37 = memref.load %arg4[%c0_13, %c0_14] : memref<1x1xf32, #tpu.memory_space<smem>>
    %38 = vector.broadcast %37 : f32 to vector<1x256xf32>
    %39 = arith.addf %36, %38 : vector<1x256xf32>
    %cst_15 = arith.constant 0.000000e+00 : f32
    %40 = vector.broadcast %cst_15 : f32 to vector<1x256xf32>
    %41 = arith.subf %40, %39 : vector<1x256xf32>
    %42 = math.exp %41 : vector<1x256xf32>
    %cst_16 = arith.constant 1.000000e+00 : f32
    %43 = vector.broadcast %cst_16 : f32 to vector<1x256xf32>
    %44 = arith.addf %43, %42 : vector<1x256xf32>
    %cst_17 = arith.constant 1.000000e+00 : f32
    %45 = vector.broadcast %cst_17 : f32 to vector<1x256xf32>
    %46 = arith.divf %45, %44 : vector<1x256xf32>
    %c0_18 = arith.constant 0 : index
    %c0_19 = arith.constant 0 : index
    %47 = vector.load %arg5[%c0_18, %c0_19] : memref<1x256xf32, #tpu.memory_space<vmem>>, vector<1x256xf32>
    tpu.vector_store %arg5[%c0_18, %c0_19], %46 {strides = array<i32>} : memref<1x256xf32, #tpu.memory_space<vmem>>, vector<1x256xf32>,
    return
  }
  func.func @transform_0(%arg0: i32) -> (i32, i32, i32) {
    %c0_i32 = arith.constant 0 : i32
    %c0_i32_0 = arith.constant 0 : i32
    %c0_i32_1 = arith.constant 0 : i32
    return %arg0, %c0_i32, %c0_i32_0 : i32, i32, i32
  }
  func.func @transform_1(%arg0: i32) -> (i32, i32) {
    %c0_i32 = arith.constant 0 : i32
    %c0_i32_0 = arith.constant 0 : i32
    %c0_i32_1 = arith.constant 0 : i32
    return %c0_i32, %c0_i32_0 : i32, i32
  }
  func.func @transform_2(%arg0: i32) -> (i32, i32) {
    %c0_i32 = arith.constant 0 : i32
    %c0_i32_0 = arith.constant 0 : i32
    %c0_i32_1 = arith.constant 0 : i32
    return %c0_i32, %c0_i32_0 : i32, i32
  }
  func.func @transform_3(%arg0: i32) -> (i32, i32) {
    %c0_i32 = arith.constant 0 : i32
    %c0_i32_0 = arith.constant 0 : i32
    %c0_i32_1 = arith.constant 0 : i32
    return %c0_i32, %c0_i32_0 : i32, i32
  }
  func.func @transform_4(%arg0: i32) -> (i32, i32) {
    %c0_i32 = arith.constant 0 : i32
    %c0_i32_0 = arith.constant 0 : i32
    return %c0_i32, %arg0 : i32, i32
  }
}

</mosaic_0001>

<bundles_post_ra>
// kernel: dssm_forward.1
= control target key start
LH: loop header
LB: loop body
LE: loop exit
PB: predicated region body
PF: predicated region fallthrough
CT: control target
= control target key end

     0   :  { %s1398_s17 = smov 0   ;;  %s1697_s0 = inlined_call_operand.vmem [shape: s32[2,8,512], index: 0, kind: input, shape index: {}]   ;;  %s1698_s1 = inlined_call_operand.vmem [shape: f32[32,128], index: 1, kind: input, shape index: {}]   ;;  %s1699_s2 = inlined_call_operand.vmem [shape: f32[2,32], index: 2, kind: input, shape index: {}]   ;;  %s1700_s3 = inlined_call_operand.<no memory space> [shape: f32[1,1], index: 3, kind: input, shape index: {}]   ;;  %s1701_s4 = inlined_call_operand.vmem [shape: f32[1,512], index: 4, kind: output, shape index: {}]  }
   0x1   :  { %9 = sst [smem:[#allocation2]] %s1700_s3 }
   0x2 LB: > { %s1404_s18 = sadd.s32 4294967295, %s1365_s17   ;;  %p1181_p0 = scmp.ge.s32.totalorder %s1365_s17, 1  ;;  %s1365_s17 = sphi %s1398_s17, %s15_s17  }
   0x3   : > { %p163_p1 = scmp.lt.s32.totalorder %s1365_s17, 3 }
   0x5   : > { %p164_p2 = pnand %p1181_p0, %p163_p1 }
   0x6   : > { %p188_p3 = scmp.lt.s32.totalorder (!%p164_p2), %s1404_s18, 1  ;;  %v209_v0 = vlaneseq (!%p164_p2)  ;;  %v1367_v1 = vmov (!%p164_p2), 1966171168   ;;  %v1368_v3 = vmov (!%p164_p2), 0.0   ;;  %v1369_v51 = vmov (!%p164_p2), 1.0|1.0  }
   0x7   : > { %167 = sbr.rel (%p164_p2) target bundleno = 550 (0x226), region = 36  ;;  %v207_v2 = vunpack.c.l.s4 (!%p164_p2), %v1367_v1  ;;  %803 = vmatprep.mubr.f32.mxu0 (!%p164_p2), %v1368_v3  ;;  %892 = vmatprep.mubr.f32.mxu1 (!%p164_p2), %v1368_v3  ;;  %s1088_s7 = sld [smem:[#allocation2]] (!%p164_p2) }
   0x8   : > { %v1413_v4 = vshrl.u32 (!%p164_p2), %v209_v0, 7  ;;  %s1184_s8 = sshll.u32 (!%p164_p2), %s1404_s18, 1 }
   0x9   : > { %v208_v5 = vunpack.c.0.s8 (!%p164_p2), %v207_v2  ;;  %p194_p4 = scmp.lt.s32.totalorder (!%p164_p2), %s1184_s8, 3 }
   0xa   : > { %v1422_v7 = vsub.s32 (!%p164_p2), 1, %v1413_v4  ;;  %v400_v10 = vadd.s32 (!%p164_p2), 8, %v1413_v4  ;;  %v401_v13 = vadd.s32 (!%p164_p2), 16, %v1413_v4  ;;  %v402_v14 = vadd.s32 (!%p164_p2), 24, %v1413_v4 }
   0xb   : > { %v1419_v6 = vsub.s32 (!%p164_p2), %v208_v5, %v1413_v4  ;;  %v403_v16 = vadd.s32 (!%p164_p2), 32, %v1413_v4  ;;  %v404_v17 = vadd.s32 (!%p164_p2), 40, %v1413_v4  ;;  %v405_v18 = vadd.s32 (!%p164_p2), 48, %v1413_v4 }
   0xc   : > { %v419_v20 = vand.u32 (!%p164_p2), 15, %v1413_v4  ;;  %v1434_v21 = vsub.s32 (!%p164_p2), 3, %v1413_v4  ;;  %v406_v22 = vadd.s32 (!%p164_p2), 56, %v1413_v4  ;;  %v1438_v23 = vsub.s32 (!%p164_p2), 0, %v1413_v4 }
   0xd   : > { %v1441_v24 = vsub.s32 (!%p164_p2), 2, %v1413_v4  ;;  %v426_v28 = vand.u32 (!%p164_p2), 15, %v400_v10  ;;  %v1445_v30 = vand.u32 (!%p164_p2), 15, %v401_v13  ;;  %v1447_v31 = vand.u32 (!%p164_p2), 15, %v402_v14 }
   0xe   : > { %s189_s3 = scalar_select %p188_p3, %s1404_s18, 1  ;;  %v1449_v32 = vand.u32 15, %v403_v16  ;;  %v1451_v33 = vand.u32 15, %v404_v17  ;;  %v1453_v34 = vand.u32 15, %v405_v18  ;;  %v1457_v37 = vand.u32 15, %v406_v22 }
   0xf   : > { %v407_v38 = vadd.s32 64, %v1413_v4  ;;  %v408_v40 = vadd.s32 72, %v1413_v4  ;;  %v409_v42 = vadd.s32 80, %v1413_v4  ;;  %v410_v55 = vadd.s32 88, %v1413_v4  ;;  %s1703_s8 = smov (!%p194_p4, %s1184_s8), 3 }
  0x10   : > { %s1253_s19 = sshll.u32 %s189_s3, 5  ;;  %v412_v16 = vadd.s32 104, %v1413_v4  ;;  %s196_s11 = scalar_lea.vmem %s1701_s4, %s1703_s8 }
  0x11   : > { %s192_s22 = scalar_lea.vmem %s1697_s0, %s1253_s19  ;;  %v1473_v52 = vand.u32 15, %v407_v38  ;;  %v1475_v53 = vand.u32 15, %v408_v40  ;;  %v1499_v59 = vand.u32 15, %v409_v42 }
  0x12   : > { %v1345_v8 = vld [vmem:[%s192_s22] ss:$8 sps:$4 sm:$0xff]   ;;  %v1347_v9 = vld [vmem:[%s192_s22 + $0x4] ss:$8 sps:$4 sm:$0xff]   ;;  %v1348_v11 = vld [vmem:[%s192_s22 + $0x10] ss:$8 sps:$4 sm:$0xff]  }
  0x13   : > { %v1350_v12 = vld [vmem:[%s192_s22 + $0x14] ss:$8 sps:$4 sm:$0xff]   ;;  %v212_v15 = vrot.slane %v1345_v8, %v1419_v6  ;;  %v226_v19 = vrot.slane %v1348_v11, %v1419_v6  ;;  %v219_v25 = vrot.slane %v1347_v9, %v1419_v6 }
  0x14   : > { %v233_v26 = vrot.slane %v1350_v12, %v1419_v6  ;;  %v1545_v12 = vand.u32 15, %v410_v55 }
  0x15   : > { %v234_v27 = vcombine.low %v212_v15, %v226_v19  ;;  %v235_v29 = vcombine.high %v212_v15, %v226_v19  ;;  %v411_v15 = vadd.s32 96, %v1413_v4 }
  0x16   : > { %v236_v39 = vcombine.low %v219_v25, %v233_v26  ;;  %v237_v41 = vcombine.high %v219_v25, %v233_v26 }
  0x17   : > { %v244_v35 = vrot.slane %v234_v27, %v1419_v6  ;;  %v258_v36 = vrot.slane %v235_v29, %v1419_v6  ;;  %v503_v22 = vand.u32 15, %v411_v15  ;;  %v510_v27 = vand.u32 15, %v412_v16 }
  0x18   : > { %v1481_v54 = vrot.slane %v236_v39, %v1419_v6  ;;  %v1497_v58 = vrot.slane %v237_v41, %v1419_v6  ;;  %v414_v29 = vadd.s32 120, %v1413_v4 }
  0x19   : > { %v277_v43 = vrot.slane %v244_v35, %v1422_v7  ;;  %v285_v44 = vrot.slane %v244_v35, %v1434_v21  ;;  %v273_v45 = vrot.slane %v244_v35, %v1438_v23  ;;  %v281_v46 = vrot.slane %v244_v35, %v1441_v24 }
  0x1a   : > { %v293_v47 = vrot.slane %v258_v36, %v1422_v7  ;;  %v301_v48 = vrot.slane %v258_v36, %v1434_v21  ;;  %v289_v49 = vrot.slane %v258_v36, %v1438_v23  ;;  %v297_v50 = vrot.slane %v258_v36, %v1441_v24 }
  0x1b   : > { %vm608_vm0 = vcmp.eq.s32.totalorder %v277_v43, %v419_v20  ;;  %vm612_vm1 = vcmp.eq.s32.totalorder %v277_v43, %v426_v28  ;;  %vm610_vm2 = vcmp.eq.s32.totalorder %v285_v44, %v419_v20  ;;  %vm614_vm3 = vcmp.eq.s32.totalorder %v285_v44, %v426_v28 }
  0x1c   : > { %vm1254_vm4 = vmpackc.low %vm612_vm1, %vm608_vm0  ;;  %vm607_vm5 = vcmp.eq.s32.totalorder %v273_v45, %v419_v20  ;;  %vm611_vm6 = vcmp.eq.s32.totalorder %v273_v45, %v426_v28  ;;  %vm609_vm7 = vcmp.eq.s32.totalorder %v281_v46, %v419_v20  ;;  %vm613_vm8 = vcmp.eq.s32.totalorder %v281_v46, %v426_v28 }
  0x1d   : > { %1255 = vmatprep.subr.msk.bf16.mxu0 %vm1254_vm4, %v1369_v51  ;;  %vm1286_vm9 = vmpackc.low %vm614_vm3, %vm610_vm2  ;;  %vm616_vm10 = vcmp.eq.s32.totalorder %v293_v47, %v1445_v30  ;;  %vm620_vm11 = vcmp.eq.s32.totalorder %v293_v47, %v1447_v31  ;;  %vm618_vm13 = vcmp.eq.s32.totalorder %v301_v48, %v1445_v30  ;;  %vm622_vm14 = vcmp.eq.s32.totalorder %v301_v48, %v1447_v31 }
  0x1e   : > { %1287 = vmatprep.subr.msk.bf16.mxu1 %vm1286_vm9, %v1369_v51  ;;  %vm1256_vm12 = vmpackc.low %vm611_vm6, %vm607_vm5  ;;  %vm615_vm0 = vcmp.eq.s32.totalorder %v289_v49, %v1445_v30  ;;  %vm619_vm1 = vcmp.eq.s32.totalorder %v289_v49, %v1447_v31  ;;  %v266_v56 = vcombine.high %v244_v35, %v244_v35  ;;  %v268_v57 = vcombine.high %v258_v36, %v258_v36 }
  0x1f   : > { %1257 = vmatpush1.bf16.msk.msra.mxu0 %vm1256_vm12, %v1369_v51  ;;  %vm1288_vm15 = vmpackc.low %vm613_vm8, %vm609_vm7  ;;  %vm617_vm3 = vcmp.eq.s32.totalorder %v297_v50, %v1445_v30  ;;  %vm621_vm4 = vcmp.eq.s32.totalorder %v297_v50, %v1447_v31  ;;  %v341_v9 = vrot.slane %v1481_v54, %v1422_v7  ;;  %v349_v10 = vrot.slane %v1481_v54, %v1434_v21 }
  0x20   : > { %1289 = vmatpush1.bf16.msk.msra.mxu1 %vm1288_vm15, %v1369_v51  ;;  %vm1258_vm2 = vmpackc.low %vm620_vm11, %vm616_vm10  ;;  %v309_v60 = vrot.slane %v266_v56, %v1422_v7  ;;  %v317_v61 = vrot.slane %v266_v56, %v1434_v21  ;;  %v305_v62 = vrot.slane %v266_v56, %v1438_v23  ;;  %v313_v63 = vrot.slane %v266_v56, %v1441_v24 }
  0x21   : > { %1259 = vmatprep.subr.msk.bf16.mxu0 %vm1258_vm2, %v1369_v51  ;;  %vm1290_vm5 = vmpackc.low %vm622_vm14, %vm618_vm13  ;;  %v325_v1 = vrot.slane %v268_v57, %v1422_v7  ;;  %v333_v2 = vrot.slane %v268_v57, %v1434_v21  ;;  %v321_v5 = vrot.slane %v268_v57, %v1438_v23  ;;  %v329_v8 = vrot.slane %v268_v57, %v1441_v24 }
  0x22   : > { %1291 = vmatprep.subr.msk.bf16.mxu1 %vm1290_vm5, %v1369_v51  ;;  %vm1260_vm6 = vmpackc.low %vm619_vm1, %vm615_vm0  ;;  %vm624_vm8 = vcmp.eq.s32.totalorder %v309_v60, %v1449_v32  ;;  %vm628_vm9 = vcmp.eq.s32.totalorder %v309_v60, %v1451_v33  ;;  %vm626_vm10 = vcmp.eq.s32.totalorder %v317_v61, %v1449_v32  ;;  %vm630_vm11 = vcmp.eq.s32.totalorder %v317_v61, %v1451_v33 }
  0x23   : > { %1261 = vmatpush1.bf16.msk.msra.mxu0 %vm1260_vm6, %v1369_v51  ;;  %vm1292_vm7 = vmpackc.low %vm621_vm4, %vm617_vm3  ;;  %vm623_vm13 = vcmp.eq.s32.totalorder %v305_v62, %v1449_v32  ;;  %vm627_vm14 = vcmp.eq.s32.totalorder %v305_v62, %v1451_v33  ;;  %vm625_vm15 = vcmp.eq.s32.totalorder %v313_v63, %v1449_v32  ;;  %vm629_vm0 = vcmp.eq.s32.totalorder %v313_v63, %v1451_v33 }
  0x24   : > { %1293 = vmatpush1.bf16.msk.msra.mxu1 %vm1292_vm7, %v1369_v51  ;;  %vm1262_vm12 = vmpackc.low %vm628_vm9, %vm624_vm8  ;;  %vm632_vm2 = vcmp.eq.s32.totalorder %v325_v1, %v1453_v34  ;;  %vm636_vm3 = vcmp.eq.s32.totalorder %v325_v1, %v1457_v37  ;;  %vm634_vm5 = vcmp.eq.s32.totalorder %v333_v2, %v1453_v34  ;;  %vm638_vm6 = vcmp.eq.s32.totalorder %v333_v2, %v1457_v37 }
  0x25   : > { %1263 = vmatprep.subr.msk.bf16.mxu0 %vm1262_vm12, %v1369_v51  ;;  %vm1294_vm1 = vmpackc.low %vm630_vm11, %vm626_vm10  ;;  %v337_v11 = vrot.slane %v1481_v54, %v1438_v23  ;;  %vm631_vm8 = vcmp.eq.s32.totalorder %v321_v5, %v1453_v34  ;;  %vm635_vm9 = vcmp.eq.s32.totalorder %v321_v5, %v1457_v37  ;;  %v345_v13 = vrot.slane %v1481_v54, %v1441_v24 }
  0x26   : > { %1295 = vmatprep.subr.msk.bf16.mxu1 %vm1294_vm1, %v1369_v51  ;;  %vm1264_vm4 = vmpackc.low %vm627_vm14, %vm623_vm13  ;;  %v357_v14 = vrot.slane %v1497_v58, %v1422_v7  ;;  %vm633_vm11 = vcmp.eq.s32.totalorder %v329_v8, %v1453_v34  ;;  %vm637_vm12 = vcmp.eq.s32.totalorder %v329_v8, %v1457_v37  ;;  %vm640_vm14 = vcmp.eq.s32.totalorder %v341_v9, %v1473_v52  ;;  %v738_v37 = vld [vmem:[%s1698_s1 + $0x18] sm:$0xff] }
  0x27   : > { %1265 = vmatpush1.bf16.msk.msra.mxu0 %vm1264_vm4, %v1369_v51  ;;  %vm1296_vm7 = vmpackc.low %vm629_vm0, %vm625_vm15  ;;  %vm644_vm15 = vcmp.eq.s32.totalorder %v341_v9, %v1475_v53  ;;  %vm642_vm0 = vcmp.eq.s32.totalorder %v349_v10, %v1473_v52  ;;  %v365_v17 = vrot.slane %v1497_v58, %v1434_v21  ;;  %vm643_vm4 = vcmp.eq.s32.totalorder %v337_v11, %v1475_v53 }
  0x28   : > { %1297 = vmatpush1.bf16.msk.msra.mxu1 %vm1296_vm7, %v1369_v51  ;;  %vm1266_vm10 = vmpackc.low %vm636_vm3, %vm632_vm2  ;;  %vm646_vm2 = vcmp.eq.s32.totalorder %v349_v10, %v1475_v53  ;;  %vm639_vm3 = vcmp.eq.s32.totalorder %v337_v11, %v1473_v52  ;;  %v267_v18 = vcombine.high %v1481_v54, %v1481_v54  ;;  %vm645_vm7 = vcmp.eq.s32.totalorder %v345_v13, %v1475_v53 }
  0x29   : > { %1267 = vmatprep.subr.msk.bf16.mxu0 %vm1266_vm10, %v1369_v51  ;;  %vm1298_vm13 = vmpackc.low %vm638_vm6, %vm634_vm5  ;;  %vm641_vm6 = vcmp.eq.s32.totalorder %v345_v13, %v1473_v52  ;;  %v353_v19 = vrot.slane %v1497_v58, %v1438_v23  ;;  %vm652_vm10 = vcmp.eq.s32.totalorder %v357_v14, %v1545_v12  ;;  %v361_v20 = vrot.slane %v1497_v58, %v1441_v24 }
  0x2a   : > { %1299 = vmatprep.subr.msk.bf16.mxu1 %vm1298_vm13, %v1369_v51  ;;  %vm1268_vm1 = vmpackc.low %vm635_vm9, %vm631_vm8  ;;  %vm648_vm8 = vcmp.eq.s32.totalorder %v357_v14, %v1499_v59  ;;  %v269_v25 = vcombine.high %v1497_v58, %v1497_v58  ;;  %v373_v26 = vrot.slane %v267_v18, %v1422_v7  ;;  %v413_v28 = vadd.s32 112, %v1413_v4 }
  0x2b   : > { %1269 = vmatpush1.bf16.msk.msra.mxu0 %vm1268_vm1, %v1369_v51  ;;  %vm1300_vm5 = vmpackc.low %vm637_vm12, %vm633_vm11  ;;  %vm650_vm13 = vcmp.eq.s32.totalorder %v365_v17, %v1499_v59  ;;  %v381_v30 = vrot.slane %v267_v18, %v1434_v21  ;;  %vm651_vm1 = vcmp.eq.s32.totalorder %v353_v19, %v1545_v12  ;;  %v369_v4 = vrot.slane %v267_v18, %v1438_v23 }
  0x2c   : > { %1301 = vmatpush1.bf16.msk.msra.mxu1 %vm1300_vm5, %v1369_v51  ;;  %vm1270_vm9 = vmpackc.low %vm644_vm15, %vm640_vm14  ;;  %vm654_vm14 = vcmp.eq.s32.totalorder %v365_v17, %v1545_v12  ;;  %v377_v31 = vrot.slane %v267_v18, %v1441_v24  ;;  %v389_v32 = vrot.slane %v269_v25, %v1422_v7  ;;  %v517_v33 = vand.u32 15, %v413_v28  ;;  %v933_v18 = vld [vmem:[%s1699_s2] sm:$0x3] }
  0x2d   : > { %1271 = vmatprep.subr.msk.bf16.mxu0 %vm1270_vm9, %v1369_v51  ;;  %vm1302_vm11 = vmpackc.low %vm646_vm2, %vm642_vm0  ;;  %vm647_vm0 = vcmp.eq.s32.totalorder %v353_v19, %v1499_v59  ;;  %v524_v34 = vand.u32 15, %v414_v29  ;;  %vm658_vm9 = vcmp.eq.s32.totalorder %v381_v30, %v503_v22  ;;  %v397_v7 = vrot.slane %v269_v25, %v1434_v21  ;;  %v735_v21 = vld [vmem:[%s1698_s1] sm:$0xff] }
  0x2e   : > { %1303 = vmatprep.subr.msk.bf16.mxu1 %vm1302_vm11, %v1369_v51  ;;  %vm1272_vm12 = vmpackc.low %vm643_vm4, %vm639_vm3  ;;  %vm649_vm3 = vcmp.eq.s32.totalorder %v361_v20, %v1499_v59  ;;  %vm653_vm4 = vcmp.eq.s32.totalorder %v361_v20, %v1545_v12  ;;  %v385_v35 = vrot.slane %v269_v25, %v1438_v23  ;;  %v393_v36 = vrot.slane %v269_v25, %v1441_v24  ;;  %v736_v23 = vld [vmem:[%s1698_s1 + $0x8] sm:$0xff]  ;;  %v737_v24 = vld [vmem:[%s1698_s1 + $0x10] sm:$0xff] }
  0x2f   : > { %1273 = vmatpush1.bf16.msk.msra.mxu0 %vm1272_vm12, %v1369_v51  ;;  %vm1304_vm15 = vmpackc.low %vm645_vm7, %vm641_vm6  ;;  %vm656_vm6 = vcmp.eq.s32.totalorder %v373_v26, %v503_v22  ;;  %vm660_vm7 = vcmp.eq.s32.totalorder %v373_v26, %v510_v27  ;;  %vm655_vm12 = vcmp.eq.s32.totalorder %v369_v4, %v503_v22  ;;  %v1089_v28 = vstv %s1088_s7 }
  0x30   : > { %1305 = vmatpush1.bf16.msk.msra.mxu1 %vm1304_vm15, %v1369_v51  ;;  %vm1274_vm2 = vmpackc.low %vm652_vm10, %vm648_vm8  ;;  %vm662_vm10 = vcmp.eq.s32.totalorder %v381_v30, %v510_v27  ;;  %vm657_vm15 = vcmp.eq.s32.totalorder %v377_v31, %v503_v22 }
  0x31   : > { %1275 = vmatprep.subr.msk.bf16.mxu0 %vm1274_vm2, %v1369_v51  ;;  %vm1306_vm5 = vmpackc.low %vm654_vm14, %vm650_vm13  ;;  %vm659_vm13 = vcmp.eq.s32.totalorder %v369_v4, %v510_v27  ;;  %vm664_vm2 = vcmp.eq.s32.totalorder %v389_v32, %v517_v33 }
  0x32   : > { %1307 = vmatprep.subr.msk.bf16.mxu1 %vm1306_vm5, %v1369_v51  ;;  %vm1276_vm8 = vmpackc.low %vm651_vm1, %vm647_vm0  ;;  %vm661_vm0 = vcmp.eq.s32.totalorder %v377_v31, %v510_v27  ;;  %vm668_vm5 = vcmp.eq.s32.totalorder %v389_v32, %v524_v34 }
  0x33   : > { %1277 = vmatpush1.bf16.msk.msra.mxu0 %vm1276_vm8, %v1369_v51  ;;  %vm1308_vm11 = vmpackc.low %vm653_vm4, %vm649_vm3  ;;  %vm666_vm4 = vcmp.eq.s32.totalorder %v397_v7, %v517_v33  ;;  %vm670_vm8 = vcmp.eq.s32.totalorder %v397_v7, %v524_v34 }
  0x34   : > { %1309 = vmatpush1.bf16.msk.msra.mxu1 %vm1308_vm11, %v1369_v51  ;;  %vm1278_vm14 = vmpackc.low %vm660_vm7, %vm656_vm6  ;;  %vm663_vm6 = vcmp.eq.s32.totalorder %v385_v35, %v517_v33  ;;  %vm667_vm7 = vcmp.eq.s32.totalorder %v385_v35, %v524_v34 }
  0x35   : > { %1279 = vmatprep.subr.msk.bf16.mxu0 %vm1278_vm14, %v1369_v51  ;;  %vm1310_vm1 = vmpackc.low %vm662_vm10, %vm658_vm9  ;;  %vm665_vm9 = vcmp.eq.s32.totalorder %v393_v36, %v517_v33  ;;  %vm669_vm10 = vcmp.eq.s32.totalorder %v393_v36, %v524_v34 }
  0x36   : > { %1311 = vmatprep.subr.msk.bf16.mxu1 %vm1310_vm1, %v1369_v51  ;;  %vm1280_vm3 = vmpackc.low %vm659_vm13, %vm655_vm12 }
  0x37   : > { %1281 = vmatpush1.bf16.msk.msra.mxu0 %vm1280_vm3, %v1369_v51  ;;  %vm1312_vm11 = vmpackc.low %vm661_vm0, %vm657_vm15  ;;  %vm934_vm15 = vcmask 261120   ;;  %vm1124_vm0 = vcmp.lt.s32.totalorder %v209_v0, 256 }
  0x38   : > { %1313 = vmatpush1.bf16.msk.msra.mxu1 %vm1312_vm11, %v1369_v51  ;;  %vm1282_vm14 = vmpackc.low %vm668_vm5, %vm664_vm2 }
  0x39   : > { %1283 = vmatprep.subr.msk.bf16.mxu0 %vm1282_vm14, %v1369_v51  ;;  %vm1314_vm1 = vmpackc.low %vm670_vm8, %vm666_vm4 }
  0x3a   : > { %1315 = vmatprep.subr.msk.bf16.mxu1 %vm1314_vm1, %v1369_v51  ;;  %vm1284_vm12 = vmpackc.low %vm667_vm7, %vm663_vm6 }
  0x3b   : > { %1285 = vmatpush1.bf16.msk.msra.mxu0 %vm1284_vm12, %v1369_v51  ;;  %vm1316_vm13 = vmpackc.low %vm669_vm10, %vm665_vm9 }
  0x3c   : > { %1317 = vmatpush1.bf16.msk.msra.mxu1 %vm1316_vm13, %v1369_v51 }
  0x3e   : > { %804 = vmatmul.mubr.f32.vlgmr.msra.gmra.mrb[0].mxu0 %v735_v21 }
  0x3f   : > { %893 = vmatmul.mubr.f32.vlgmr.msra.gmra.mrb[0].mxu1 %v735_v21  ;;  %809 = vmatprep.mubr.f32.mxu0 %v1368_v3 }
  0x40   : > { %898 = vmatprep.mubr.f32.mxu1 %v1368_v3 }
  0x42   : > { %810 = vmatmul.mubr.f32.gmra.mrb[2].mxu0 %v736_v23 }
  0x43   : > { %899 = vmatmul.mubr.f32.gmra.mrb[2].mxu1 %v736_v23  ;;  %815 = vmatprep.mubr.f32.mxu0 %v1368_v3 }
  0x44   : > { %904 = vmatprep.mubr.f32.mxu1 %v1368_v3 }
  0x46   : > { %816 = vmatmul.mubr.f32.gmra.mrb[4].mxu0 %v737_v24 }
  0x47   : > { %905 = vmatmul.mubr.f32.gmra.mrb[4].mxu1 %v737_v24  ;;  %821 = vmatprep.mubr.f32.mxu0 %v1368_v3 }
  0x48   : > { %910 = vmatprep.mubr.f32.mxu1 %v1368_v3 }
  0x4a   : > { %822 = vmatmul.mubr.f32.gmra.mrb[6].mxu0 %v738_v37 }
  0x4b   : > { %911 = vmatmul.mubr.f32.gmra.mrb[6].mxu1 %v738_v37  ;;  %1002 = vmatprep.mubr.f32.mxu0 %v1368_v3 }
  0x4c   : > { %1073 = vmatprep.mubr.f32.mxu1 %v1368_v3 }
 0x111   : > { %v805_v38 = vpop.f32.mrb[0].mxu0 }
 0x112   : > { %v894_v39 = vpop.f32.mrb[0].mxu1  ;;  %v807_v40 = vpop.f32.mrb[1].mxu0  ;;  %v917_v43 = vmax.f32 %v805_v38, 0.0 }
 0x113   : > { %v896_v41 = vpop.f32.mrb[1].mxu1  ;;  %v919_v47 = vmax.f32 %v894_v39, 0.0  ;;  %v918_v48 = vmax.f32 %v807_v40, 0.0 }
 0x114   : > { %v920_v52 = vmax.f32 %v896_v41, 0.0 }
 0x115   : > { %v811_v42 = vpop.f32.mrb[2].mxu0 }
 0x116   : > { %v921_v44 = vmax.f32 %v811_v42, 0.0  ;;  %v900_v45 = vpop.f32.mrb[2].mxu1  ;;  %v813_v46 = vpop.f32.mrb[3].mxu0 }
 0x117   : > { %v923_v49 = vmax.f32 %v900_v45, 0.0  ;;  %v922_v50 = vmax.f32 %v813_v46, 0.0  ;;  %v902_v51 = vpop.f32.mrb[3].mxu1 }
 0x118   : > { %v1320_v53 = vpack.c.bf16 %v921_v44, %v917_v43  ;;  %v924_v54 = vmax.f32 %v902_v51, 0.0 }
 0x119   : > { %v1328_v55 = vpack.c.bf16 %v923_v49, %v919_v47  ;;  %v1318_v56 = vpack.c.bf16 %v922_v50, %v918_v48  ;;  %v817_v3 = vpop.f32.mrb[4].mxu0 }
 0x11a   : > { %v1326_v57 = vpack.c.bf16 %v924_v54, %v920_v52  ;;  %v906_v58 = vpop.f32.mrb[4].mxu1  ;;  %v819_v59 = vpop.f32.mrb[5].mxu0  ;;  %v925_v62 = vmax.f32 %v817_v3, 0.0 }
 0x11b   : > { %v908_v60 = vpop.f32.mrb[5].mxu1  ;;  %1319 = vmatprep.subr.bf16.mxu0 %v1318_v56  ;;  %v927_v5 = vmax.f32 %v906_v58, 0.0  ;;  %v926_v8 = vmax.f32 %v819_v59, 0.0 }
 0x11c   : > { %1327 = vmatprep.subr.bf16.mxu1 %v1326_v57  ;;  %1321 = vmatpush1.bf16.msra.mxu0 %v1320_v53  ;;  %v928_v12 = vmax.f32 %v908_v60, 0.0 }
 0x11d   : > { %1329 = vmatpush1.bf16.msra.mxu1 %v1328_v55  ;;  %v823_v61 = vpop.f32.mrb[6].mxu0 }
 0x11e   : > { %v929_v63 = vmax.f32 %v823_v61, 0.0  ;;  %v912_v1 = vpop.f32.mrb[6].mxu1  ;;  %v825_v2 = vpop.f32.mrb[7].mxu0 }
 0x11f   : > { %v931_v9 = vmax.f32 %v912_v1, 0.0  ;;  %v930_v10 = vmax.f32 %v825_v2, 0.0  ;;  %v914_v11 = vpop.f32.mrb[7].mxu1 }
 0x120   : > { %v1324_v13 = vpack.c.bf16 %v929_v63, %v925_v62  ;;  %v932_v14 = vmax.f32 %v914_v11, 0.0 }
 0x121   : > { %v1332_v15 = vpack.c.bf16 %v931_v9, %v927_v5  ;;  %v1322_v16 = vpack.c.bf16 %v930_v10, %v926_v8 }
 0x122   : > { %v1330_v17 = vpack.c.bf16 %v932_v14, %v928_v12 }
 0x123   : > { %1323 = vmatprep.subr.bf16.mxu0 %v1322_v16 }
 0x124   : > { %1331 = vmatprep.subr.bf16.mxu1 %v1330_v17  ;;  %1325 = vmatpush1.bf16.msra.mxu0 %v1324_v13 }
 0x125   : > { %1333 = vmatpush1.bf16.msra.mxu1 %v1332_v15 }
 0x127   : > { %1249 = vmatmul.mubr.msk.f32.vlgmr.msra.gmra.mrb[8].mxu0 %vm934_vm15, %v933_v18 }
 0x128   : > { %1250 = vmatmul.mubr.msk.f32.vlgmr.msra.gmra.mrb[8].mxu1 %vm934_vm15, %v933_v18 }
 0x1fa   : > { %v1004_v19 = vpop.f32.mrb[8].mxu0 }
 0x1fb   : > { %v1075_v20 = vpop.f32.mrb[8].mxu1  ;;  %v1006_v22 = vpop.f32.mrb[9].mxu0 }
 0x1fc   : > { %v1082_v25 = vrot.slane %v1075_v20, 1  ;;  %v1077_v26 = vpop.f32.mrb[9].mxu1 }
 0x1fd   : > { %v1083_v27 = vrot.slane %v1077_v26, 1 }
 0x1fe   : > { %v1086_v29 = vadd.f32 %v1082_v25, %v1004_v19 }
 0x1ff   : > { %v1087_v30 = vadd.f32 %v1083_v27, %v1006_v22 }
 0x200   : > { %v1090_v4 = vadd.f32 %v1089_v28, %v1086_v29 }
 0x201   : > { %v1091_v31 = vadd.f32 %v1089_v28, %v1087_v30 }
 0x202   : > { %v1092_v32 = vsub.f32 0.0, %v1090_v4 }
 0x203   : > { %v1093_v33 = vsub.f32 0.0, %v1091_v31 }
 0x204   : > { %v1094_v34 = vmul.f32 1.442695, %v1092_v32 }
 0x205   : > { %v1096_v7 = vmul.f32 1.442695, %v1093_v33 }
 0x206   : > { %1351 = vpow2.f32 %v1094_v34 }
 0x207   : > { %1353 = vpow2.f32 %v1096_v7 }
 0x210   : > { %v1352_v35 = vpop.eup %1351 }
 0x211   : > { %v1354_v36 = vpop.eup %1353  ;;  %v1098_v21 = vadd.f32 1.0, %v1352_v35 }
 0x212   : > { %v1099_v23 = vadd.f32 1.0, %v1354_v36 }
 0x213   : > { %1355 = vrcp.f32 %v1098_v21 }
 0x214   : > { %1357 = vrcp.f32 %v1099_v23 }
 0x21d   : > { %v1356_v24 = vpop.eup %1355 }
 0x21e   : > { %v1358_v37 = vpop.eup %1357 }
 0x21f   : > { %v1106_v38 = vcombine.low %v1356_v24, %v1358_v37 }
 0x221   : > { %v1113_v39 = vrot.slane %v1106_v38, %v1419_v6 }
 0x223   : > { %v1120_v40 = vrot.slane %v1113_v39, %v1419_v6 }
 0x225   : > { %1126 = vst.msk [vmem:[%s196_s11] sm:$0x3] %vm1124_vm0, %v1120_v40 }
 0x226 PF: > { %s15_s17 = sadd.s32 1, %s1365_s17  }
 0x227   : > { %p12_p5 = scmp.ge.s32.totalorder %s15_s17, 4  }
 0x229   :  { %14 = sbr.rel (!%p12_p5) target bundleno = 2 (0x2), region = 66 }

</bundles_post_ra>
